<compile_context>
chip_gen: v5e
topology: v5e:2x2
jax: 0.10.0
libtpu: 0.0.40
codegen_flags: <defaults>
</compile_context>

<pallas_src>
import functools

import jax
import jax.numpy as jnp
from jax.experimental import pallas as pl
from jax.experimental.pallas import tpu as pltpu

_EPS = 1e-8  # PyTorch cosine_similarity default eps


def _round_up(x, m):
    return ((x + m - 1) // m) * m


def _vmem_capacity_bytes():
    try:
        cap = getattr(pltpu.get_tpu_info(), "vmem_capacity_bytes", None)
        if cap:
            return int(cap)
    except Exception:
        pass
    return 64 * 1024 * 1024  # conservative (v7x-sized) fallback


def _default_num_slices():
    # Two slices only pay off on chips with >1 TensorCore per device (v4/v5p/v7x);
    # on single-TC v5e/v6e a second slice is just a serial pipeline restart.
    try:
        kind = jax.devices()[0].device_kind.lower()
    except Exception:
        return 1
    if "lite" in kind or "v5e" in kind or "v6e" in kind:
        return 1
    return 2


def _cosine_contrastive_kernel(x1_ref, x2_ref, lbl_ref, out_ref, acc_ref, *,
                               margin, tile_b, tiles_per_slice, true_b,
                               apply_mask, use_mxu_reduce):
    c = pl.program_id(0)   # parallel slice (megacore / dual-TC)
    i = pl.program_id(1)   # streaming tile within the slice

    @pl.when(i == 0)
    def _():
        acc_ref[...] = jnp.zeros_like(acc_ref)

    x1 = x1_ref[...].astype(jnp.float32)    # (tile_b, D)
    x2 = x2_ref[...].astype(jnp.float32)    # (tile_b, D)
    lbl = lbl_ref[...].astype(jnp.float32)  # (tile_b, 1)

    if use_mxu_reduce:
        # Small-D sub-32-bit path: the 2 XLU units saturate before HBM, so push
        # the three per-row feature reductions to the otherwise idle MXU: stack
        # the elementwise products along sublanes, one matmul with a ones matrix.
        prod = jnp.concatenate(
            [(x1 * x2).astype(jnp.bfloat16),
             (x1 * x1).astype(jnp.bfloat16),
             (x2 * x2).astype(jnp.bfloat16)],
            axis=0)                                            # (3*tile_b, D)
        ones = jnp.ones((prod.shape[1], 128), dtype=jnp.bfloat16)
        sums = jnp.dot(prod, ones,
                       preferred_element_type=jnp.float32)     # (3*tile_b, 128)
        w12 = sums[0 * tile_b:1 * tile_b, 0:1]
        w1 = sums[1 * tile_b:2 * tile_b, 0:1]
        w2 = sums[2 * tile_b:3 * tile_b, 0:1]
    else:
        # f32 path: XLU lane reductions keep full f32 accuracy.
        w12 = jnp.sum(x1 * x2, axis=1, keepdims=True)          # (tile_b, 1)
        w1 = jnp.sum(x1 * x1, axis=1, keepdims=True)
        w2 = jnp.sum(x2 * x2, axis=1, keepdims=True)

    # Modern-torch eps semantics: cos = dot / (max(||x1||, eps) * max(||x2||, eps)),
    # implemented on the EUP as min(rsqrt(w), 1/eps) == 1 / max(sqrt(w), eps).
    inv1 = jnp.minimum(jax.lax.rsqrt(w1), jnp.float32(1.0 / _EPS))
    inv2 = jnp.minimum(jax.lax.rsqrt(w2), jnp.float32(1.0 / _EPS))
    cos = w12 * inv1 * inv2                                    # (tile_b, 1)

    pos = jnp.square(1.0 - cos)
    neg = jnp.square(jnp.maximum(cos - margin, 0.0))
    per_row = lbl * pos + (1.0 - lbl) * neg

    if apply_mask:
        # Only needed when margin <= 0: zero-padded rows would then contribute
        # margin^2 instead of 0.  With margin > 0 padded rows are already 0.
        row0 = (c * tiles_per_slice + i) * tile_b
        rows = row0 + jax.lax.broadcasted_iota(jnp.int32, (tile_b, 1), 0)
        per_row = jnp.where(rows < true_b, per_row, 0.0)

    # Pure VALU accumulate each tile; the cross-sublane reduce runs once per slice.
    acc_ref[...] += per_row

    @pl.when(i == pl.num_programs(1) - 1)
    def _():
        total = jnp.sum(acc_ref[...], axis=0, keepdims=True)   # (1, 1)
        out_ref[...] = jnp.broadcast_to(total, out_ref.shape)  # lane-dense (8,128)


def cosine_contrastive_loss(output1, output2, label, margin=0.9,
                            tile_b=None, num_slices=None):
    """output1/output2: (B, D); label: (B,) with 0/1 values. Returns scalar f32 loss."""
    B, D = output1.shape
    itemsize = jnp.dtype(output1.dtype).itemsize

    if num_slices is None:
        num_slices = _default_num_slices()
    num_slices = max(1, int(num_slices))

    # Sub-32-bit inputs with modest D: offload the lane reductions to the MXU.
    use_mxu_reduce = (itemsize < 4) and (D <= 1024) and (D % 16 == 0)

    # Sublane multiple for packed dtypes (8 for f32, 16 for bf16, 32 for 8-bit).
    sub = max(8, 32 // max(1, itemsize))

    # Generation-aware VMEM budgets.
    vmem_cap = _vmem_capacity_bytes()
    input_budget = min(48 << 20, (vmem_cap * 3) // 8)        # 24 MiB v7x, 48 MiB v5e/v6e
    vmem_limit_cap = min(100 << 20, (vmem_cap * 13) // 16)   # ~52 MiB v7x, 100 MiB v5e/v6e

    # Per-row VMEM estimate: double-buffered input blocks + f32 intermediates
    # (upcasts + 3 products) + label buffers + 128-lane-padded accumulator.
    per_row_bytes = 4 * D * itemsize + 5 * D * 4 + 3 * 512
    if use_mxu_reduce:
        per_row_bytes += 3 * D * 2 + 3 * 128 * 4  # stacked bf16 products + matmul out
    max_tile = max(sub, (input_budget // per_row_bytes) // sub * sub)

    # Size the tile by DMA payload (~2 MiB per input block per grid step), not just
    # by the VMEM ceiling: the grid loop costs ~0.35 us/step.
    if tile_b is None:
        tile_b = (2 << 20) // max(1, D * itemsize)
    tile_b = min(int(tile_b), max_tile, _round_up(pl.cdiv(B, num_slices), sub))
    tile_b = max(sub, (tile_b // sub) * sub)

    tiles_per_slice = int(pl.cdiv(B, num_slices * tile_b))
    b_pad = num_slices * tiles_per_slice * tile_b
    pad = b_pad - B

    x1, x2 = output1, output2
    lbl2d = label.reshape(B, 1).astype(jnp.float32)
    if pad:
        x1 = jnp.pad(x1, ((0, pad), (0, 0)))
        x2 = jnp.pad(x2, ((0, pad), (0, 0)))
        lbl2d = jnp.pad(lbl2d, ((0, pad), (0, 0)))

    # Zero-padded rows contribute exactly 0 when margin > 0, so the in-kernel tail
    # mask is only emitted when it can actually matter.
    apply_mask = bool(pad) and (float(margin) <= 0.0)

    vmem_limit = int(min(vmem_limit_cap,
                         max(8 << 20, per_row_bytes * tile_b + (6 << 20))))

    kernel = functools.partial(
        _cosine_contrastive_kernel,
        margin=float(margin),
        tile_b=tile_b,
        tiles_per_slice=tiles_per_slice,
        true_b=B,
        apply_mask=apply_mask,
        use_mxu_reduce=use_mxu_reduce,
    )

    def in_map(c, i):
        return (c * tiles_per_slice + i, 0)

    partials = pl.pallas_call(
        kernel,
        out_shape=jax.ShapeDtypeStruct((num_slices * 8, 128), jnp.float32),
        grid_spec=pltpu.PrefetchScalarGridSpec(
            num_scalar_prefetch=0,
            grid=(num_slices, tiles_per_slice),
            in_specs=[
                pl.BlockSpec((tile_b, D), in_map),
                pl.BlockSpec((tile_b, D), in_map),
                pl.BlockSpec((tile_b, 1), in_map),
            ],
            out_specs=pl.BlockSpec((8, 128), lambda c, i: (c, 0)),
            scratch_shapes=[pltpu.VMEM((tile_b, 1), jnp.float32)],
        ),
        compiler_params=pltpu.CompilerParams(
            dimension_semantics=("parallel", "arbitrary"),
            vmem_limit_bytes=vmem_limit,
        ),
    )(x1, x2, lbl2d)

    # One un-normalized partial per slice; normalize by the true batch size once.
    per_slice = partials.reshape(num_slices, 8, 128)[:, 0, 0]
    return jnp.sum(per_slice) / jnp.float32(B)


def _reference(output1, output2, label, margin=0.9):
    x1 = output1.astype(jnp.float32)
    x2 = output2.astype(jnp.float32)
    n1 = jnp.maximum(jnp.sqrt(jnp.sum(x1 * x1, axis=1)), _EPS)
    n2 = jnp.maximum(jnp.sqrt(jnp.sum(x2 * x2, axis=1)), _EPS)
    cos = jnp.sum(x1 * x2, axis=1) / (n1 * n2)
    lbl = label.astype(jnp.float32)
    return jnp.mean(lbl * (1.0 - cos) ** 2) + jnp.mean(
        (1.0 - lbl) * jnp.maximum(cos - margin, 0.0) ** 2)


if __name__ == "__main__":
    # Case 1: small, even f32 shape (single tile).
    k1, k2, k3 = jax.random.split(jax.random.PRNGKey(0), 3)
    B, D = 8, 32
    o1 = jax.random.normal(k1, (B, D), dtype=jnp.float32)
    o2 = jax.random.normal(k2, (B, D), dtype=jnp.float32)
    lbl = (jax.random.uniform(k3, (B,)) > 0.5).astype(jnp.float32)
    loss = jax.block_until_ready(cosine_contrastive_loss(o1, o2, lbl, margin=0.9))
    ref = _reference(o1, o2, lbl, margin=0.9)
    assert jnp.allclose(loss, ref, rtol=1e-5, atol=1e-5), (loss, ref)

    # Case 2: ragged batch + bf16 inputs (exercises zero-pad and the MXU-reduce path).
    k4, k5, k6 = jax.random.split(jax.random.PRNGKey(1), 3)
    B2, D2 = 13, 64
    p1 = jax.random.normal(k4, (B2, D2), dtype=jnp.bfloat16)
    p2 = jax.random.normal(k5, (B2, D2), dtype=jnp.bfloat16)
    lbl2 = (jax.random.uniform(k6, (B2,)) > 0.5).astype(jnp.float32)
    loss2 = jax.block_until_ready(cosine_contrastive_loss(p1, p2, lbl2, margin=0.9))
    ref2 = _reference(p1, p2, lbl2, margin=0.9)
    assert jnp.allclose(loss2, ref2, rtol=2e-2, atol=2e-3), (loss2, ref2)

    # Case 3: multi-tile streaming, ragged tail with margin <= 0 (exercises the
    # tail mask, accumulator reset and multi-step pipelining).
    k7, k8, k9 = jax.random.split(jax.random.PRNGKey(2), 3)
    B3, D3 = 300, 128
    q1 = jax.random.normal(k7, (B3, D3), dtype=jnp.float32)
    q2 = jax.random.normal(k8, (B3, D3), dtype=jnp.float32)
    lbl3 = (jax.random.uniform(k9, (B3,)) > 0.5).astype(jnp.float32)
    loss3 = jax.block_until_ready(
        cosine_contrastive_loss(q1, q2, lbl3, margin=0.0, tile_b=64))
    ref3 = _reference(q1, q2, lbl3, margin=0.0)
    assert jnp.allclose(loss3, ref3, rtol=1e-5, atol=1e-5), (loss3, ref3)

    print("KERNEL_OK")
</pallas_src>

<mosaic_0001>
module attributes {stable_mosaic.version = 11 : i64} {
  func.func @_cosine_contrastive_kernel(%arg0: i32, %arg1: i32, %arg2: memref<8x32xf32, #tpu.memory_space<vmem>>, %arg3: memref<8x32xf32, #tpu.memory_space<vmem>>, %arg4: memref<8x1xf32, #tpu.memory_space<vmem>>, %arg5: memref<8x128xf32, #tpu.memory_space<vmem>>, %arg6: memref<8x1xf32, #tpu.memory_space<vmem>>) attributes {dimension_semantics = [#tpu.dimension_semantics<parallel>, #tpu.dimension_semantics<arbitrary>], iteration_bounds = array<i64: 2, 1>, scalar_prefetch = 0 : i64, scratch_operands = 1 : i64, tpu.core_type = #tpu.core_type<tc>, window_params = [{transform_indices = @transform_0, window_bounds = array<i64: 8, 32>}, {transform_indices = @transform_1, window_bounds = array<i64: 8, 32>}, {transform_indices = @transform_2, window_bounds = array<i64: 8, 1>}, {transform_indices = @transform_3, window_bounds = array<i64: 8, 128>}]} {
    %c0_i32 = arith.constant 0 : i32
    %0 = arith.cmpi eq, %arg1, %c0_i32 : i32
    %1 = arith.extui %0 : i1 to i32
    %c0_i32_0 = arith.constant 0 : i32
    %2 = arith.cmpi ne, %1, %c0_i32_0 : i32
    scf.if %2 {
      %cst_20 = arith.constant 0.000000e+00 : f32
      %42 = vector.broadcast %cst_20 : f32 to vector<8x1xf32>
      %c0_21 = arith.constant 0 : index
      %c0_22 = arith.constant 0 : index
      %43 = vector.load %arg6[%c0_21, %c0_22] : memref<8x1xf32, #tpu.memory_space<vmem>>, vector<8x1xf32>
      tpu.vector_store %arg6[%c0_21, %c0_22], %42 {strides = array<i32>} : memref<8x1xf32, #tpu.memory_space<vmem>>, vector<8x1xf32>,
    } else {
    }
    %c0 = arith.constant 0 : index
    %c0_1 = arith.constant 0 : index
    %3 = vector.load %arg2[%c0, %c0_1] : memref<8x32xf32, #tpu.memory_space<vmem>>, vector<8x32xf32>
    %c0_2 = arith.constant 0 : index
    %c0_3 = arith.constant 0 : index
    %4 = vector.load %arg3[%c0_2, %c0_3] : memref<8x32xf32, #tpu.memory_space<vmem>>, vector<8x32xf32>
    %c0_4 = arith.constant 0 : index
    %c0_5 = arith.constant 0 : index
    %5 = vector.load %arg4[%c0_4, %c0_5] : memref<8x1xf32, #tpu.memory_space<vmem>>, vector<8x1xf32>
    %6 = arith.mulf %3, %4 : vector<8x32xf32>
    %cst = arith.constant dense<0.000000e+00> : vector<8xf32>
    %7 = vector.multi_reduction <add>, %6, %cst [1] : vector<8x32xf32> to vector<8xf32>
    %8 = vector.shape_cast %7 : vector<8xf32> to vector<8x1xf32>
    %9 = arith.mulf %3, %3 : vector<8x32xf32>
    %cst_6 = arith.constant dense<0.000000e+00> : vector<8xf32>
    %10 = vector.multi_reduction <add>, %9, %cst_6 [1] : vector<8x32xf32> to vector<8xf32>
    %11 = vector.shape_cast %10 : vector<8xf32> to vector<8x1xf32>
    %12 = arith.mulf %4, %4 : vector<8x32xf32>
    %cst_7 = arith.constant dense<0.000000e+00> : vector<8xf32>
    %13 = vector.multi_reduction <add>, %12, %cst_7 [1] : vector<8x32xf32> to vector<8xf32>
    %14 = vector.shape_cast %13 : vector<8xf32> to vector<8x1xf32>
    %15 = math.rsqrt %11 : vector<8x1xf32>
    %cst_8 = arith.constant 1.000000e+08 : f32
    %16 = vector.broadcast %cst_8 : f32 to vector<8x1xf32>
    %17 = arith.minimumf %15, %16 : vector<8x1xf32>
    %18 = math.rsqrt %14 : vector<8x1xf32>
    %cst_9 = arith.constant 1.000000e+08 : f32
    %19 = vector.broadcast %cst_9 : f32 to vector<8x1xf32>
    %20 = arith.minimumf %18, %19 : vector<8x1xf32>
    %21 = arith.mulf %8, %17 : vector<8x1xf32>
    %22 = arith.mulf %21, %20 : vector<8x1xf32>
    %cst_10 = arith.constant 1.000000e+00 : f32
    %23 = vector.broadcast %cst_10 : f32 to vector<8x1xf32>
    %24 = arith.subf %23, %22 : vector<8x1xf32>
    %25 = arith.mulf %24, %24 : vector<8x1xf32>
    %cst_11 = arith.constant 0.899999976 : f32
    %26 = vector.broadcast %cst_11 : f32 to vector<8x1xf32>
    %27 = arith.subf %22, %26 : vector<8x1xf32>
    %cst_12 = arith.constant 0.000000e+00 : f32
    %28 = vector.broadcast %cst_12 : f32 to vector<8x1xf32>
    %29 = arith.maximumf %27, %28 : vector<8x1xf32>
    %30 = arith.mulf %29, %29 : vector<8x1xf32>
    %31 = arith.mulf %5, %25 : vector<8x1xf32>
    %cst_13 = arith.constant 1.000000e+00 : f32
    %32 = vector.broadcast %cst_13 : f32 to vector<8x1xf32>
    %33 = arith.subf %32, %5 : vector<8x1xf32>
    %34 = arith.mulf %33, %30 : vector<8x1xf32>
    %35 = arith.addf %31, %34 : vector<8x1xf32>
    %c0_14 = arith.constant 0 : index
    %c0_15 = arith.constant 0 : index
    %36 = vector.load %arg6[%c0_14, %c0_15] : memref<8x1xf32, #tpu.memory_space<vmem>>, vector<8x1xf32>
    %37 = arith.addf %36, %35 : vector<8x1xf32>
    %c0_16 = arith.constant 0 : index
    %c0_17 = arith.constant 0 : index
    %38 = vector.load %arg6[%c0_16, %c0_17] : memref<8x1xf32, #tpu.memory_space<vmem>>, vector<8x1xf32>
    tpu.vector_store %arg6[%c0_16, %c0_17], %37 {strides = array<i32>} : memref<8x1xf32, #tpu.memory_space<vmem>>, vector<8x1xf32>,
    %c0_i32_18 = arith.constant 0 : i32
    %39 = arith.cmpi eq, %arg1, %c0_i32_18 : i32
    %40 = arith.extui %39 : i1 to i32
    %c0_i32_19 = arith.constant 0 : i32
    %41 = arith.cmpi ne, %40, %c0_i32_19 : i32
    scf.if %41 {
      %c0_20 = arith.constant 0 : index
      %c0_21 = arith.constant 0 : index
      %42 = vector.load %arg6[%c0_20, %c0_21] : memref<8x1xf32, #tpu.memory_space<vmem>>, vector<8x1xf32>
      %cst_22 = arith.constant dense<0.000000e+00> : vector<1xf32>
      %43 = vector.multi_reduction <add>, %42, %cst_22 [0] : vector<8x1xf32> to vector<1xf32>
      %44 = vector.shape_cast %43 : vector<1xf32> to vector<1x1xf32>
      %45 = vector.shape_cast %44 : vector<1x1xf32> to vector<1x1xf32>
      %46 = vector.broadcast %45 : vector<1x1xf32> to vector<8x128xf32>
      %c0_23 = arith.constant 0 : index
      %c0_24 = arith.constant 0 : index
      %47 = vector.load %arg5[%c0_23, %c0_24] : memref<8x128xf32, #tpu.memory_space<vmem>>, vector<8x128xf32>
      tpu.vector_store %arg5[%c0_23, %c0_24], %46 {strides = array<i32>} : memref<8x128xf32, #tpu.memory_space<vmem>>, vector<8x128xf32>,
    } else {
    }
    return
  }
  func.func @transform_0(%arg0: i32, %arg1: i32) -> (i32, i32) {
    %c1_i32 = arith.constant 1 : i32
    %0 = arith.muli %arg0, %c1_i32 : i32
    %1 = arith.addi %0, %arg1 : i32
    %c0_i32 = arith.constant 0 : i32
    %c0_i32_0 = arith.constant 0 : i32
    return %1, %c0_i32 : i32, i32
  }
  func.func @transform_1(%arg0: i32, %arg1: i32) -> (i32, i32) {
    %c1_i32 = arith.constant 1 : i32
    %0 = arith.muli %arg0, %c1_i32 : i32
    %1 = arith.addi %0, %arg1 : i32
    %c0_i32 = arith.constant 0 : i32
    %c0_i32_0 = arith.constant 0 : i32
    return %1, %c0_i32 : i32, i32
  }
  func.func @transform_2(%arg0: i32, %arg1: i32) -> (i32, i32) {
    %c1_i32 = arith.constant 1 : i32
    %0 = arith.muli %arg0, %c1_i32 : i32
    %1 = arith.addi %0, %arg1 : i32
    %c0_i32 = arith.constant 0 : i32
    %c0_i32_0 = arith.constant 0 : i32
    return %1, %c0_i32 : i32, i32
  }
  func.func @transform_3(%arg0: i32, %arg1: i32) -> (i32, i32) {
    %c0_i32 = arith.constant 0 : i32
    %c0_i32_0 = arith.constant 0 : i32
    return %arg0, %c0_i32 : i32, i32
  }
}

</mosaic_0001>

<bundles_post_ra>
// kernel: tpu_custom_call.1
= control target key start
LH: loop header
LB: loop body
LE: loop exit
PB: predicated region body
PF: predicated region fallthrough
CT: control target
= control target key end

     0   :  { %8 = vsyncpa [#allocation4], 0  ;;  %s811_s0 = inlined_call_operand.vmem [shape: f32[16,32], index: 0, kind: input, shape index: {}]   ;;  %s812_s1 = inlined_call_operand.hbm [shape: f32[16,32], index: 1, kind: input, shape index: {}]   ;;  %s813_s2 = inlined_call_operand.vmem [shape: f32[16,1], index: 2, kind: input, shape index: {}]   ;;  %s814_s3 = inlined_call_operand.hbm [shape: f32[16,128], index: 3, kind: output, shape index: {}]  }
   0x1   :  { %10 = vsyncpa [#allocation4 + $0x1], 0 }
   0x2   :  { %11 = vsyncpa [#allocation5], 0 }
   0x3   :  { %13 = vsyncpa [#allocation5 + $0x1], 0  ;;  %s669_s12 = smov 0   ;;  %s671_s13 = smov 0  }
   0x4   :  { %s673_s14 = smov 0   ;;  %s675_s15 = smov 0  }
   0x5   :  { %s677_s16 = smov 0   ;;  %s679_s17 = smov 0  }
   0x6 LB: > { %s447_s18 = sadd.s32 4294967295, %s645_s17   ;;  %s448_s19 = sadd.s32 4294967294, %s645_s17   ;;  %s645_s17 = sphi %s679_s17, %s19_s17   ;;  %s641_s16 = sphi %s677_s16, %s823_s16   ;;  %s637_s15 = sphi %s675_s15, %s822_s15   ;;  %s633_s14 = sphi %s673_s14, %s821_s14   ;;  %s629_s13 = sphi %s671_s13, %s820_s13   ;;  %s625_s12 = sphi %s669_s12, %s819_s12  }
   0x7   : > { %s31_s20 = sadd.s32 1, %s641_s16  ;;  %s68_s21 = sadd.s32 1, %s633_s14 }
   0x8   : > { %p33_p0 = scmp.ge.s32.totalorder %s31_s20, 2  ;;  %p75_p1 = scmp.ne.s32.totalorder %s633_s14, %s629_s13 }
   0x9   : > { %p76_p2 = scmp.eq.s32.totalorder %s645_s17, 0  ;;  %p81_p3 = scmp.ne.s32.totalorder %s629_s13, %s625_s12 }
   0xa   : > { %s825_s20 = smov (%p33_p0, %s31_s20), 0  ;;  %p82_p5 = scmp.eq.s32.totalorder %s447_s18, 0 }
   0xb   : > { %p710_p4 = por %p76_p2, %p75_p1  ;;  %s65_s23 = ssub.s32 %s641_s16, %s825_s20 }
   0xc   : > { %p133_p6 = scmp.eq.s32.totalorder %s447_s18, 1  ;;  %p66_p7 = scmp.eq.s32.totalorder %s65_s23, 0 }
   0xd   : > { %p716_p8 = por %p82_p5, %p81_p3  ;;  %p139_p10 = scmp.eq.s32.totalorder %s448_s19, 1 }
   0xe   : > { %p720_p9 = por %p133_p6, %p75_p1  ;;  %p450_p12 = scmp.ge.s32.totalorder %s645_s17, 2 }
   0xf   : > { %s725_s26 = scalar_select %p66_p7, %s633_s14, %s68_s21  }
  0x10   : > { %p727_p11 = por %p139_p10, %p81_p3  ;;  %p475_p13 = scmp.lt.s32.totalorder %s645_s17, 2 }
  0x11   : > { %s168_s28 = sand.u32 1, %s633_s14   ;;  %s452_s30 = sshll.u32 %s641_s16, 3 }
  0x12   : > { %s451_s29 = sshll.u32 %s168_s28, 3  ;;  %s177_s6 = scalar_lea.hbm %s812_s1, %s452_s30 }
  0x13   : > { %s172_s7 = scalar_lea.vmem [#allocation3], %s451_s29  ;;  %s179_s9 = sshll.u32 %s177_s6, 4  ;;  %s180_s9 = int_to_ptr.hbm [resolvable:$true] %s179_s9 }
  0x14   : > { %s181_s8 = sshll.u32 %s172_s7, 4  ;;  %p468_p0 = pnand %p475_p13, %p710_p4  ;;  %s182_s8 = int_to_ptr.vmem [resolvable:$true] %s181_s8 }
  0x15   : > { %p453_p1 = scmp.ge.s32.totalorder %s645_s17, 1  ;;  %p195_p2 = scmp.lt.s32.totalorder %s645_s17, 3 }
  0x16   : > { %s169_s10 = scalar_lea.sflag [#allocation4], %s168_s28 }
  0x17   : > { %470 = dma.hbm_to_vmem [thread:$0]  (!%p468_p0), %s180_s9, 128, %s182_s8, %s169_s10  }
  0x18   : > { %p196_p3 = pnand %p453_p1, %p195_p2 }
  0x19   : > { %s743_s11 = sand.u32 (!%p196_p3), 1, %s629_s13  }
  0x1a   : > { %199 = sbr.rel (%p196_p3) target bundleno = 339 (0x153), region = 32  ;;  %s454_s18 = sshll.u32 (!%p196_p3), %s743_s11, 3 }
  0x1b   : > { %s202_s19 = scalar_lea.sflag (!%p196_p3), [#allocation4], %s743_s11  ;;  %s205_s21 = scalar_lea.vmem (!%p196_p3), [#allocation3], %s454_s18 }
  0x1f   : > { %616 = dma.done.wait (%p716_p8), %s202_s19, 128  }
  0x20   : > { %618 = vsyncadd (%p716_p8), %s202_s19, 4294967168  ;;  %p240_p4 = scmp.lt.s32.totalorder %s637_s15, 1  ;;  %vm262_vm0 = vcmask 261120   ;;  %v259_v1 = vld [vmem:[%s205_s21] sm:$0xff]  ;;  %vm256_vm1 = vcmask 7168   ;;  %v647_v8 = vmov 0.0  }
  0x21   : > { %v270_v6 = vmul.f32 %v259_v1, %v259_v1  ;;  %257 = vst.msk [vmem:[#allocation2] sm:$0xff] %vm256_vm1, %v647_v8  ;;  %v648_v15 = vmov 0   ;;  %s460_s6 = sshll.u32 %s637_s15, 3  ;;  %s238_s10 = scalar_lea.vmem [#allocation6], %s454_s18 }
  0x22   : > { %s755_s22 = scalar_select %p240_p4, %s637_s15, 1  ;;  %527 = vset.pattern.permute.xlu1 %v648_v15  ;;  %528 = vset.pattern.permute.xlu0 %v648_v15 }
  0x23   : > { %v271_v7 = vsel %vm262_vm0, %v270_v6, 0.0  ;;  %s339_s9 = scalar_lea.hbm %s814_s3, %s460_s6  ;;  %s341_s19 = sshll.u32 %s238_s10, 4  ;;  %s342_s19 = int_to_ptr.vmem [resolvable:$true] %s341_s19 }
  0x24   : > { %s456_s23 = sshll.u32 %s755_s22, 3  ;;  %s343_s21 = sshll.u32 %s339_s9, 4  ;;  %s344_s21 = int_to_ptr.hbm [resolvable:$true] %s343_s21 }
  0x25   : > { %s243_s30 = scalar_lea.vmem %s811_s0, %s456_s23  ;;  %s250_s5 = scalar_lea.vmem %s813_s2, %s456_s23 }
  0x26   : > { %v258_v0 = vld [vmem:[%s243_s30] sm:$0xff]  ;;  %s329_s22 = scalar_lea.sflag [#allocation5], %s743_s11  ;;  %s577_s23 = sshra.s32 %s344_s21, 4  ;;  %s578_s23 = int_to_ptr.hbm [resolvable:$true] %s577_s23 }
  0x27   : > { %v266_v2 = vmul.f32 %v258_v0, %v258_v0  ;;  %v261_v3 = vmul.f32 %v259_v1, %v258_v0  ;;  %v260_v31 = vld [vmem:[%s250_s5] sm:$0xff]  ;;  %s579_s28 = scalar_lea.hbm %s578_s23, 8  ;;  %s583_s30 = scalar_lea.hbm %s814_s3, 16 }
  0x28   : > { %v304_v34 = vsub.f32 1.0, %v260_v31  ;;  %v307_v40 = vld [vmem:[#allocation2] sm:$0xff]  ;;  %p580_p5 = scmp.ne.s32.totalorder %s578_s23, %s579_s28  ;;  %p584_p8 = scmp.lt.s32.totalorder %s578_s23, %s814_s3 }
  0x29   : > { %v267_v4 = vsel %vm262_vm0, %v266_v2, 0.0  ;;  %v263_v5 = vsel %vm262_vm0, %v261_v3, 0.0  ;;  %p585_p10 = scmp.lt.s32.totalorder %s583_s30, %s579_s28 }
  0x2a   : > { %268 = vadd.xlane.f32.xlu0 %v267_v4  ;;  %264 = vadd.xlane.f32.xlu1 %v263_v5  ;;  %p581_p6 = pnand %p580_p5, %p720_p9 }
  0x2b   : > { %p586_p13 = por %p585_p10, %p584_p8 }
  0x2c   : > { %p582_p7 = pneg %p581_p6 }
  0x2e   : > { %p587_p0 = pnand %p586_p13, %p582_p7 }
  0x32   : > { %272 = vadd.xlane.f32.xlu0 %v271_v7 }
  0x9d   : > { %v269_v9 = vpop.xlane.xlu0 %268  ;;  %v265_v26 = vpop.xlane.xlu1 %264 }
  0x9e   : > { %529 = vrsqrt.f32 %v269_v9  ;;  %vm280_vm3 = vweird.f32 %v269_v9 }
  0xa4   : > { %v530_v10 = vpop.eup %529 }
  0xa5   : > { %v275_v11 = vmul.f32 %v530_v10, %v269_v9  ;;  %v273_v12 = vpop.xlane.xlu0 %272  ;;  %vm281_vm2 = vweird.f32 %v530_v10 }
  0xa6   : > { %531 = vrsqrt.f32 %v273_v12  ;;  %vm282_vm4 = vmor %vm280_vm3, %vm281_vm2  ;;  %vm291_vm6 = vweird.f32 %v273_v12 }
  0xa7   : > { %v276_v13 = vmul.f32 %v530_v10, %v275_v11 }
  0xa9   : > { %v277_v14 = vmul.f32 0.5, %v276_v13 }
  0xab   : > { %v278_v16 = vsub.f32 1.5, %v277_v14 }
  0xac   : > { %v532_v17 = vpop.eup %531 }
  0xad   : > { %v286_v18 = vmul.f32 %v532_v17, %v273_v12  ;;  %v279_v19 = vmul.f32 %v530_v10, %v278_v16  ;;  %vm292_vm5 = vweird.f32 %v532_v17 }
  0xae   : > { %vm293_vm7 = vmor %vm291_vm6, %vm292_vm5 }
  0xaf   : > { %v287_v20 = vmul.f32 %v532_v17, %v286_v18  ;;  %v283_v22 = vsel %vm282_vm4, %v530_v10, %v279_v19 }
  0xb0   : > { %v284_v24 = vmin.f32 %v283_v22, 1e+08 }
  0xb1   : > { %v288_v21 = vmul.f32 0.5, %v287_v20 }
  0xb2   : > { %v296_v29 = vmul.f32 %v284_v24, %v265_v26 }
  0xb3   : > { %v289_v23 = vsub.f32 1.5, %v288_v21 }
  0xb5   : > { %v290_v25 = vmul.f32 %v532_v17, %v289_v23 }
  0xb7   : > { %v294_v27 = vsel %vm293_vm7, %v532_v17, %v290_v25 }
  0xb8   : > { %v295_v28 = vmin.f32 %v294_v27, 1e+08 }
  0xba   : > { %v297_v30 = vmul.f32 %v296_v29, %v295_v28 }
  0xbc   : > { %v298_v32 = vsub.f32 1.0, %v297_v30  ;;  %v458_v33 = vadd.f32 -0.9, %v297_v30 }
  0xbe   : > { %v299_v35 = vmul.f32 %v298_v32, %v298_v32  ;;  %v301_v36 = vmax.f32 %v458_v33, 0.0 }
  0xc0   : > { %v302_v37 = vmul.f32 %v301_v36, %v301_v36  ;;  %v303_v38 = vmul.f32 %v299_v35, %v260_v31 }
  0xc2   : > { %v305_v39 = vmul.f32 %v304_v34, %v302_v37 }
  0xc4   : > { %v306_v41 = vadd.f32 %v305_v39, %v303_v38 }
  0xc6   : > { %v308_v42 = vadd.f32 %v307_v40, %v306_v41 }
  0xc8   : > { %310 = vst.msk [vmem:[#allocation2] sm:$0xff] %vm256_vm1, %v308_v42 }
  0xcf   : > { %v314_v43 = vld [vmem:[#allocation2] sm:$0xff] }
  0xd0   : > { %v315_v44 = vsel %vm256_vm1, %v314_v43, 0.0 }
  0xd1   : > { %v316_v45 = vrot.slane %v315_v44, 4 }
  0xd3   : > { %v317_v46 = vadd.f32 %v316_v45, %v315_v44 }
  0xd5   : > { %v318_v47 = vrot.slane %v317_v46, 2 }
  0xd7   : > { %v319_v48 = vadd.f32 %v318_v47, %v317_v46 }
  0xd9   : > { %v320_v49 = vrot.slane %v319_v48, 1 }
  0xdb   : > { %v321_v50 = vadd.f32 %v320_v49, %v319_v48 }
  0xdd   : > { %324 = vperm.xlu1 %527, %v321_v50  }
 0x14f   : > { %v325_v51 = vpop.permute.xlu1 %324 }
 0x150   : > { %327 = vst [vmem:[%s238_s10] sm:$0xff] %v325_v51 }
 0x151   : > { %590 = shalt.err (!%p587_p0)
}
 0x152   : > { %465 = dma.vmem_to_hbm [thread:$0]  (%p720_p9), %s342_s19, 128, %s344_s21, %s329_s22  }
 0x153 PF: > { %s355_s11 = sand.u32 1, %s625_s12   ;;  %p472_p1 = pnand %p450_p12, %p727_p11 }
 0x154   : > { %s356_s4 = scalar_lea.sflag [#allocation5], %s355_s11 }
 0x155   : > { %p473_p2 = pneg %p472_p1 }
 0x157   : > { %620 = dma.done.wait (%p473_p2), %s356_s4, 128  }
 0x158   : > { %622 = vsyncadd (%p473_p2), %s356_s4, 4294967168  ;;  %s19_s17 = sadd.s32 1, %s645_s17   ;;  %s819_s12 = smov %s629_s13 }
 0x159   : > { %p16_p3 = scmp.ge.s32.totalorder %s19_s17, 4   ;;  %s820_s13 = smov %s633_s14 }
 0x15a   : > { %s821_s14 = smov %s725_s26  ;;  %s822_s15 = smov %s641_s16 }
 0x15b   : > { %s823_s16 = smov %s825_s20  ;;  %18 = sbr.rel (!%p16_p3) target bundleno = 6 (0x6), region = 91 }
 0x160   :  { %362 = vsyncpa [#allocation4], 1 }
 0x161   :  { %364 = vsyncpa [#allocation4 + $0x1], 1 }
 0x162   :  { %365 = vsyncpa [#allocation5], 1 }
 0x163   :  { %367 = vsyncpa [#allocation5 + $0x1], 1 }

</bundles_post_ra>
